<compile_context>
chip_gen: v7x
topology: tpu7x:2x2x1
jax: 0.10.0
libtpu: 0.0.40
codegen_flags: <defaults>
</compile_context>

<pallas_src>
import jax
import jax.numpy as jnp
from jax.experimental import pallas as pl
from jax.experimental.pallas import tpu as pltpu

OBS_DIM = 16
HIDDEN = 64
ACTION_DIM = 8
ACT_PAD = 128          # lane-dense padded action head width
LN_EPS = 1e-5
TB_MAX = 256           # max batch tile (VMEM use is tiny; fits all generations)


def _linear_ln_tanh(x, w, b, g, beta):
    """Linear -> LayerNorm -> Tanh (one MLP layer). bf16 matmul, f32 LN/tanh."""
    h = jnp.dot(x.astype(jnp.bfloat16), w,
                preferred_element_type=jnp.float32) + b
    mu = jnp.mean(h, axis=-1, keepdims=True)
    var = jnp.mean((h - mu) ** 2, axis=-1, keepdims=True)
    h = (h - mu) * jax.lax.rsqrt(var + LN_EPS)
    return jnp.tanh(h * g + beta)


def mlp_policy_kernel(obs_ref,
                      w1_ref, b1_ref, g1_ref, be1_ref,
                      w2_ref, b2_ref, g2_ref, be2_ref,
                      wa_ref, ba_ref,
                      out_ref):
    x = obs_ref[...]
    h = _linear_ln_tanh(x, w1_ref[...], b1_ref[...], g1_ref[...], be1_ref[...])
    h = _linear_ln_tanh(h, w2_ref[...], b2_ref[...], g2_ref[...], be2_ref[...])
    # action head (padded to 128 lanes) + output activation ('tanh')
    a = jnp.dot(h.astype(jnp.bfloat16), wa_ref[...],
                preferred_element_type=jnp.float32) + ba_ref[...]
    out_ref[...] = jnp.tanh(a)


def mlp_policy_forward(obs, params, tb_max=TB_MAX):
    B = obs.shape[0]
    # Round batch up to a sublane multiple, pick the largest tile <= tb_max,
    # then pad the batch to a multiple of the tile (padded rows are zeros and
    # get sliced away; LN of a zero row is finite thanks to eps).
    bp = ((B + 7) // 8) * 8
    tb = min(tb_max, bp)
    bp = ((bp + tb - 1) // tb) * tb
    if bp != B:
        obs = jnp.pad(obs, ((0, bp - B), (0, 0)))

    grid = (bp // tb,)

    def full_spec(p):
        # whole parameter resident in VMEM for every grid step
        return pl.BlockSpec(p.shape, lambda i: (0, 0))

    in_specs = [pl.BlockSpec((tb, OBS_DIM), lambda i: (i, 0))]
    in_specs += [full_spec(p) for p in params]
    out_specs = pl.BlockSpec((tb, ACT_PAD), lambda i: (i, 0))

    out = pl.pallas_call(
        mlp_policy_kernel,
        out_shape=jax.ShapeDtypeStruct((bp, ACT_PAD), jnp.float32),
        grid=grid,
        in_specs=in_specs,
        out_specs=out_specs,
        compiler_params=pltpu.CompilerParams(
            dimension_semantics=("parallel",)),
    )(obs, *params)

    return out[:B, :ACTION_DIM]


def make_params(key):
    """Deterministic synthetic parameters (shapes match the PyTorch module).
    Matmul weights are stored transposed (in, out) and in bf16; the action
    head is zero-padded to ACT_PAD output lanes."""
    k1, k2, k3, k4, k5 = jax.random.split(key, 5)

    w1 = (jax.random.normal(k1, (OBS_DIM, HIDDEN), jnp.float32)
          / jnp.sqrt(OBS_DIM)).astype(jnp.bfloat16)
    b1 = 0.05 * jax.random.normal(k4, (1, HIDDEN), jnp.float32)
    g1 = jnp.ones((1, HIDDEN), jnp.float32)
    be1 = jnp.zeros((1, HIDDEN), jnp.float32)

    w2 = (jax.random.normal(k2, (HIDDEN, HIDDEN), jnp.float32)
          / jnp.sqrt(HIDDEN)).astype(jnp.bfloat16)
    b2 = 0.05 * jax.random.normal(k5, (1, HIDDEN), jnp.float32)
    g2 = jnp.ones((1, HIDDEN), jnp.float32)
    be2 = jnp.zeros((1, HIDDEN), jnp.float32)

    # action_net: Linear(hidden_sizes[-1], action_dim), orthogonal-ish gain 0.01
    wa_core = 0.01 * jax.random.normal(k3, (HIDDEN, ACTION_DIM), jnp.float32)
    wa = jnp.zeros((HIDDEN, ACT_PAD), jnp.float32).at[:, :ACTION_DIM].set(
        wa_core).astype(jnp.bfloat16)
    ba = jnp.zeros((1, ACT_PAD), jnp.float32)

    return [w1, b1, g1, be1, w2, b2, g2, be2, wa, ba]


def reference_forward(obs, params):
    """Pure-JAX f32 reference (same quantized weights, f32 activations)."""
    w1, b1, g1, be1, w2, b2, g2, be2, wa, ba = params

    def layer(x, w, b, g, beta):
        h = jnp.dot(x, w.astype(jnp.float32),
                    preferred_element_type=jnp.float32) + b
        mu = jnp.mean(h, axis=-1, keepdims=True)
        var = jnp.mean((h - mu) ** 2, axis=-1, keepdims=True)
        return jnp.tanh((h - mu) * jax.lax.rsqrt(var + LN_EPS) * g + beta)

    h = layer(obs, w1, b1, g1, be1)
    h = layer(h, w2, b2, g2, be2)
    a = jnp.dot(h, wa.astype(jnp.float32),
                preferred_element_type=jnp.float32) + ba
    return jnp.tanh(a)[:, :ACTION_DIM]


if __name__ == "__main__":
    key = jax.random.PRNGKey(0)
    kp, ko1, ko2 = jax.random.split(key, 3)
    params = make_params(kp)

    # Small batch (whole batch in one grid step).
    obs = jax.random.normal(ko1, (8, OBS_DIM), jnp.float32)
    actions = mlp_policy_forward(obs, params)
    actions = actions.reshape(-1, ACTION_DIM)  # matches .reshape((-1, action_dim))
    jax.block_until_ready(actions)
    ref = reference_forward(obs, params)
    assert actions.shape == (8, ACTION_DIM)
    assert jnp.allclose(actions, ref, atol=1e-2, rtol=1e-2), (
        float(jnp.max(jnp.abs(actions - ref))))

    # Ragged batch (exercises padding path; not a multiple of 8 or of the tile).
    obs2 = jax.random.normal(ko2, (200, OBS_DIM), jnp.float32)
    actions2 = mlp_policy_forward(obs2, params).reshape(-1, ACTION_DIM)
    jax.block_until_ready(actions2)
    ref2 = reference_forward(obs2, params)
    assert actions2.shape == (200, ACTION_DIM)
    assert jnp.allclose(actions2, ref2, atol=1e-2, rtol=1e-2), (
        float(jnp.max(jnp.abs(actions2 - ref2))))

    print("KERNEL_OK")
</pallas_src>

<mosaic_0001>
module attributes {stable_mosaic.version = 11 : i64} {
  func.func @mlp_policy_kernel(%arg0: i32, %arg1: memref<8x16xf32, #tpu.memory_space<vmem>>, %arg2: memref<16x64xbf16, #tpu.memory_space<vmem>>, %arg3: memref<1x64xf32, #tpu.memory_space<vmem>>, %arg4: memref<1x64xf32, #tpu.memory_space<vmem>>, %arg5: memref<1x64xf32, #tpu.memory_space<vmem>>, %arg6: memref<64x64xbf16, #tpu.memory_space<vmem>>, %arg7: memref<1x64xf32, #tpu.memory_space<vmem>>, %arg8: memref<1x64xf32, #tpu.memory_space<vmem>>, %arg9: memref<1x64xf32, #tpu.memory_space<vmem>>, %arg10: memref<64x128xbf16, #tpu.memory_space<vmem>>, %arg11: memref<1x128xf32, #tpu.memory_space<vmem>>, %arg12: memref<8x128xf32, #tpu.memory_space<vmem>>) attributes {dimension_semantics = [#tpu.dimension_semantics<parallel>], iteration_bounds = array<i64: 1>, scalar_prefetch = 0 : i64, scratch_operands = 0 : i64, tpu.core_type = #tpu.core_type<tc>, window_params = [{transform_indices = @transform_0, window_bounds = array<i64: 8, 16>}, {pipeline_mode = #tpu.pipeline_mode<synchronous>, transform_indices = @transform_1, window_bounds = array<i64: 16, 64>}, {pipeline_mode = #tpu.pipeline_mode<synchronous>, transform_indices = @transform_2, window_bounds = array<i64: 1, 64>}, {pipeline_mode = #tpu.pipeline_mode<synchronous>, transform_indices = @transform_3, window_bounds = array<i64: 1, 64>}, {pipeline_mode = #tpu.pipeline_mode<synchronous>, transform_indices = @transform_4, window_bounds = array<i64: 1, 64>}, {pipeline_mode = #tpu.pipeline_mode<synchronous>, transform_indices = @transform_5, window_bounds = array<i64: 64, 64>}, {pipeline_mode = #tpu.pipeline_mode<synchronous>, transform_indices = @transform_6, window_bounds = array<i64: 1, 64>}, {pipeline_mode = #tpu.pipeline_mode<synchronous>, transform_indices = @transform_7, window_bounds = array<i64: 1, 64>}, {pipeline_mode = #tpu.pipeline_mode<synchronous>, transform_indices = @transform_8, window_bounds = array<i64: 1, 64>}, {pipeline_mode = #tpu.pipeline_mode<synchronous>, transform_indices = @transform_9, window_bounds = array<i64: 64, 128>}, {pipeline_mode = #tpu.pipeline_mode<synchronous>, transform_indices = @transform_10, window_bounds = array<i64: 1, 128>}, {transform_indices = @transform_11, window_bounds = array<i64: 8, 128>}]} {
    %c0 = arith.constant 0 : index
    %c0_0 = arith.constant 0 : index
    %0 = vector.load %arg1[%c0, %c0_0] : memref<8x16xf32, #tpu.memory_space<vmem>>, vector<8x16xf32>
    %c0_1 = arith.constant 0 : index
    %c0_2 = arith.constant 0 : index
    %1 = vector.load %arg2[%c0_1, %c0_2] : memref<16x64xbf16, #tpu.memory_space<vmem>>, vector<16x64xbf16>
    %c0_3 = arith.constant 0 : index
    %c0_4 = arith.constant 0 : index
    %2 = vector.load %arg3[%c0_3, %c0_4] : memref<1x64xf32, #tpu.memory_space<vmem>>, vector<1x64xf32>
    %c0_5 = arith.constant 0 : index
    %c0_6 = arith.constant 0 : index
    %3 = vector.load %arg4[%c0_5, %c0_6] : memref<1x64xf32, #tpu.memory_space<vmem>>, vector<1x64xf32>
    %c0_7 = arith.constant 0 : index
    %c0_8 = arith.constant 0 : index
    %4 = vector.load %arg5[%c0_7, %c0_8] : memref<1x64xf32, #tpu.memory_space<vmem>>, vector<1x64xf32>
    %5 = arith.truncf %0 : vector<8x16xf32> to vector<8x16xbf16>
    %cst = arith.constant dense<0.000000e+00> : vector<8x64xf32>
    %6 = tpu.matmul %5, %1, %cst {dimension_numbers = #tpu.dot_dimension_numbers<[1], [0], [0], [1], [0, 0, 1, 1], [], []>} : vector<8x16xbf16>, vector<16x64xbf16>, vector<8x64xf32> -> vector<8x64xf32>
    %7 = vector.broadcast %2 : vector<1x64xf32> to vector<8x64xf32>
    %8 = arith.addf %6, %7 : vector<8x64xf32>
    %cst_9 = arith.constant dense<0.000000e+00> : vector<8xf32>
    %9 = vector.multi_reduction <add>, %8, %cst_9 [1] : vector<8x64xf32> to vector<8xf32>
    %10 = vector.shape_cast %9 : vector<8xf32> to vector<8x1xf32>
    %cst_10 = arith.constant 6.400000e+01 : f32
    %11 = vector.broadcast %cst_10 : f32 to vector<8x1xf32>
    %12 = arith.divf %10, %11 : vector<8x1xf32>
    %13 = vector.broadcast %12 : vector<8x1xf32> to vector<8x64xf32>
    %14 = arith.subf %8, %13 : vector<8x64xf32>
    %15 = arith.mulf %14, %14 : vector<8x64xf32>
    %cst_11 = arith.constant dense<0.000000e+00> : vector<8xf32>
    %16 = vector.multi_reduction <add>, %15, %cst_11 [1] : vector<8x64xf32> to vector<8xf32>
    %17 = vector.shape_cast %16 : vector<8xf32> to vector<8x1xf32>
    %cst_12 = arith.constant 6.400000e+01 : f32
    %18 = vector.broadcast %cst_12 : f32 to vector<8x1xf32>
    %19 = arith.divf %17, %18 : vector<8x1xf32>
    %20 = vector.broadcast %12 : vector<8x1xf32> to vector<8x64xf32>
    %21 = arith.subf %8, %20 : vector<8x64xf32>
    %cst_13 = arith.constant 9.99999974E-6 : f32
    %22 = vector.broadcast %cst_13 : f32 to vector<8x1xf32>
    %23 = arith.addf %19, %22 : vector<8x1xf32>
    %24 = math.rsqrt %23 : vector<8x1xf32>
    %25 = vector.broadcast %24 : vector<8x1xf32> to vector<8x64xf32>
    %26 = arith.mulf %21, %25 : vector<8x64xf32>
    %27 = vector.broadcast %3 : vector<1x64xf32> to vector<8x64xf32>
    %28 = arith.mulf %26, %27 : vector<8x64xf32>
    %29 = vector.broadcast %4 : vector<1x64xf32> to vector<8x64xf32>
    %30 = arith.addf %28, %29 : vector<8x64xf32>
    %31 = math.tanh %30 : vector<8x64xf32>
    %c0_14 = arith.constant 0 : index
    %c0_15 = arith.constant 0 : index
    %32 = vector.load %arg6[%c0_14, %c0_15] : memref<64x64xbf16, #tpu.memory_space<vmem>>, vector<64x64xbf16>
    %c0_16 = arith.constant 0 : index
    %c0_17 = arith.constant 0 : index
    %33 = vector.load %arg7[%c0_16, %c0_17] : memref<1x64xf32, #tpu.memory_space<vmem>>, vector<1x64xf32>
    %c0_18 = arith.constant 0 : index
    %c0_19 = arith.constant 0 : index
    %34 = vector.load %arg8[%c0_18, %c0_19] : memref<1x64xf32, #tpu.memory_space<vmem>>, vector<1x64xf32>
    %c0_20 = arith.constant 0 : index
    %c0_21 = arith.constant 0 : index
    %35 = vector.load %arg9[%c0_20, %c0_21] : memref<1x64xf32, #tpu.memory_space<vmem>>, vector<1x64xf32>
    %36 = arith.truncf %31 : vector<8x64xf32> to vector<8x64xbf16>
    %cst_22 = arith.constant dense<0.000000e+00> : vector<8x64xf32>
    %37 = tpu.matmul %36, %32, %cst_22 {dimension_numbers = #tpu.dot_dimension_numbers<[1], [0], [0], [1], [0, 0, 1, 1], [], []>} : vector<8x64xbf16>, vector<64x64xbf16>, vector<8x64xf32> -> vector<8x64xf32>
    %38 = vector.broadcast %33 : vector<1x64xf32> to vector<8x64xf32>
    %39 = arith.addf %37, %38 : vector<8x64xf32>
    %cst_23 = arith.constant dense<0.000000e+00> : vector<8xf32>
    %40 = vector.multi_reduction <add>, %39, %cst_23 [1] : vector<8x64xf32> to vector<8xf32>
    %41 = vector.shape_cast %40 : vector<8xf32> to vector<8x1xf32>
    %cst_24 = arith.constant 6.400000e+01 : f32
    %42 = vector.broadcast %cst_24 : f32 to vector<8x1xf32>
    %43 = arith.divf %41, %42 : vector<8x1xf32>
    %44 = vector.broadcast %43 : vector<8x1xf32> to vector<8x64xf32>
    %45 = arith.subf %39, %44 : vector<8x64xf32>
    %46 = arith.mulf %45, %45 : vector<8x64xf32>
    %cst_25 = arith.constant dense<0.000000e+00> : vector<8xf32>
    %47 = vector.multi_reduction <add>, %46, %cst_25 [1] : vector<8x64xf32> to vector<8xf32>
    %48 = vector.shape_cast %47 : vector<8xf32> to vector<8x1xf32>
    %cst_26 = arith.constant 6.400000e+01 : f32
    %49 = vector.broadcast %cst_26 : f32 to vector<8x1xf32>
    %50 = arith.divf %48, %49 : vector<8x1xf32>
    %51 = vector.broadcast %43 : vector<8x1xf32> to vector<8x64xf32>
    %52 = arith.subf %39, %51 : vector<8x64xf32>
    %cst_27 = arith.constant 9.99999974E-6 : f32
    %53 = vector.broadcast %cst_27 : f32 to vector<8x1xf32>
    %54 = arith.addf %50, %53 : vector<8x1xf32>
    %55 = math.rsqrt %54 : vector<8x1xf32>
    %56 = vector.broadcast %55 : vector<8x1xf32> to vector<8x64xf32>
    %57 = arith.mulf %52, %56 : vector<8x64xf32>
    %58 = vector.broadcast %34 : vector<1x64xf32> to vector<8x64xf32>
    %59 = arith.mulf %57, %58 : vector<8x64xf32>
    %60 = vector.broadcast %35 : vector<1x64xf32> to vector<8x64xf32>
    %61 = arith.addf %59, %60 : vector<8x64xf32>
    %62 = math.tanh %61 : vector<8x64xf32>
    %63 = arith.truncf %62 : vector<8x64xf32> to vector<8x64xbf16>
    %c0_28 = arith.constant 0 : index
    %c0_29 = arith.constant 0 : index
    %64 = vector.load %arg10[%c0_28, %c0_29] : memref<64x128xbf16, #tpu.memory_space<vmem>>, vector<64x128xbf16>
    %cst_30 = arith.constant dense<0.000000e+00> : vector<8x128xf32>
    %65 = tpu.matmul %63, %64, %cst_30 {dimension_numbers = #tpu.dot_dimension_numbers<[1], [0], [0], [1], [0, 0, 1, 1], [], []>} : vector<8x64xbf16>, vector<64x128xbf16>, vector<8x128xf32> -> vector<8x128xf32>
    %c0_31 = arith.constant 0 : index
    %c0_32 = arith.constant 0 : index
    %66 = vector.load %arg11[%c0_31, %c0_32] : memref<1x128xf32, #tpu.memory_space<vmem>>, vector<1x128xf32>
    %67 = vector.broadcast %66 : vector<1x128xf32> to vector<8x128xf32>
    %68 = arith.addf %65, %67 : vector<8x128xf32>
    %69 = math.tanh %68 : vector<8x128xf32>
    %c0_33 = arith.constant 0 : index
    %c0_34 = arith.constant 0 : index
    %70 = vector.load %arg12[%c0_33, %c0_34] : memref<8x128xf32, #tpu.memory_space<vmem>>, vector<8x128xf32>
    tpu.vector_store %arg12[%c0_33, %c0_34], %69 {strides = array<i32>} : memref<8x128xf32, #tpu.memory_space<vmem>>, vector<8x128xf32>,
    return
  }
  func.func @transform_0(%arg0: i32) -> (i32, i32) {
    %c0_i32 = arith.constant 0 : i32
    %c0_i32_0 = arith.constant 0 : i32
    return %arg0, %c0_i32 : i32, i32
  }
  func.func @transform_1(%arg0: i32) -> (i32, i32) {
    %c0_i32 = arith.constant 0 : i32
    %c0_i32_0 = arith.constant 0 : i32
    %c0_i32_1 = arith.constant 0 : i32
    return %c0_i32, %c0_i32_0 : i32, i32
  }
  func.func @transform_2(%arg0: i32) -> (i32, i32) {
    %c0_i32 = arith.constant 0 : i32
    %c0_i32_0 = arith.constant 0 : i32
    %c0_i32_1 = arith.constant 0 : i32
    return %c0_i32, %c0_i32_0 : i32, i32
  }
  func.func @transform_3(%arg0: i32) -> (i32, i32) {
    %c0_i32 = arith.constant 0 : i32
    %c0_i32_0 = arith.constant 0 : i32
    %c0_i32_1 = arith.constant 0 : i32
    return %c0_i32, %c0_i32_0 : i32, i32
  }
  func.func @transform_4(%arg0: i32) -> (i32, i32) {
    %c0_i32 = arith.constant 0 : i32
    %c0_i32_0 = arith.constant 0 : i32
    %c0_i32_1 = arith.constant 0 : i32
    return %c0_i32, %c0_i32_0 : i32, i32
  }
  func.func @transform_5(%arg0: i32) -> (i32, i32) {
    %c0_i32 = arith.constant 0 : i32
    %c0_i32_0 = arith.constant 0 : i32
    %c0_i32_1 = arith.constant 0 : i32
    return %c0_i32, %c0_i32_0 : i32, i32
  }
  func.func @transform_6(%arg0: i32) -> (i32, i32) {
    %c0_i32 = arith.constant 0 : i32
    %c0_i32_0 = arith.constant 0 : i32
    %c0_i32_1 = arith.constant 0 : i32
    return %c0_i32, %c0_i32_0 : i32, i32
  }
  func.func @transform_7(%arg0: i32) -> (i32, i32) {
    %c0_i32 = arith.constant 0 : i32
    %c0_i32_0 = arith.constant 0 : i32
    %c0_i32_1 = arith.constant 0 : i32
    return %c0_i32, %c0_i32_0 : i32, i32
  }
  func.func @transform_8(%arg0: i32) -> (i32, i32) {
    %c0_i32 = arith.constant 0 : i32
    %c0_i32_0 = arith.constant 0 : i32
    %c0_i32_1 = arith.constant 0 : i32
    return %c0_i32, %c0_i32_0 : i32, i32
  }
  func.func @transform_9(%arg0: i32) -> (i32, i32) {
    %c0_i32 = arith.constant 0 : i32
    %c0_i32_0 = arith.constant 0 : i32
    %c0_i32_1 = arith.constant 0 : i32
    return %c0_i32, %c0_i32_0 : i32, i32
  }
  func.func @transform_10(%arg0: i32) -> (i32, i32) {
    %c0_i32 = arith.constant 0 : i32
    %c0_i32_0 = arith.constant 0 : i32
    %c0_i32_1 = arith.constant 0 : i32
    return %c0_i32, %c0_i32_0 : i32, i32
  }
  func.func @transform_11(%arg0: i32) -> (i32, i32) {
    %c0_i32 = arith.constant 0 : i32
    %c0_i32_0 = arith.constant 0 : i32
    return %arg0, %c0_i32 : i32, i32
  }
}

</mosaic_0001>

<bundles_post_ra>
// kernel: tpu_custom_call.1
= control target key start
LH: loop header
LB: loop body
LE: loop exit
PB: predicated region body
PF: predicated region fallthrough
CT: control target
= control target key end

     0   :  { %16 = vsyncpa [#allocation3], 0  ;;  %s919_s0 = inlined_call_operand.hbm [shape: f32[8,16], index: 0, kind: input, shape index: {}]   ;;  %s920_s1 = inlined_call_operand.hbm [shape: bf16[16,64], index: 1, kind: input, shape index: {}]   ;;  %s921_s2 = inlined_call_operand.vmem [shape: f32[1,64], index: 2, kind: input, shape index: {}]   ;;  %s922_s3 = inlined_call_operand.vmem [shape: f32[1,64], index: 3, kind: input, shape index: {}]   ;;  %s923_s4 = inlined_call_operand.hbm [shape: f32[1,64], index: 4, kind: input, shape index: {}]   ;;  %s924_s5 = inlined_call_operand.hbm [shape: bf16[64,64], index: 5, kind: input, shape index: {}]   ;;  %s925_s6 = inlined_call_operand.hbm [shape: f32[1,64], index: 6, kind: input, shape index: {}]   ;;  %s926_s7 = inlined_call_operand.hbm [shape: f32[1,64], index: 7, kind: input, shape index: {}]   ;;  %s927_s8 = inlined_call_operand.hbm [shape: f32[1,64], index: 8, kind: input, shape index: {}]   ;;  %s928_s9 = inlined_call_operand.vmem [shape: bf16[64,128], index: 9, kind: input, shape index: {}]   ;;  %s929_s10 = inlined_call_operand.vmem [shape: f32[1,128], index: 10, kind: input, shape index: {}]   ;;  %s930_s11 = inlined_call_operand.hbm [shape: f32[8,128], index: 11, kind: output, shape index: {}]  }
   0x1   :  { %17 = vsyncpa [#allocation6], 0 }
   0x2   :  { %18 = vsyncpa [#allocation9], 0 }
   0x3   :  { %19 = vsyncpa [#allocation12], 0 }
   0x4   :  { %20 = vsyncpa [#allocation4], 0  ;;  %s712_s17 = smov [#allocation5]   ;;  %s526_s21 = scalar_lea.hbm %s920_s1, 128 }
   0x5   :  { %s36_s18 = sshll.u32 %s712_s17, 4  ;;  %p527_p0 = scmp.ne.s32.totalorder %s920_s1, %s526_s21  ;;  %s37_s18 = int_to_ptr.vmem [resolvable:$true] %s36_s18 }
   0x6   :  { %p530_p1 = scmp.lt.u32.totalorder %s526_s21, %s920_s1 }
   0x8   :  { %p532_p2 = pnand %p530_p1, %p527_p0 }
   0xa   :  { %535 = shalt.err (!%p532_p2)
}
   0xb   :  { %s536_s26 = scalar_lea.vmem %s37_s18, 128  ;;  %p541_p4 = scmp.lt.s32.totalorder %s37_s18, %s37_s18 }
   0xc   :  { %p537_p3 = scmp.ne.s32.totalorder %s37_s18, %s536_s26  ;;  %p542_p5 = scmp.lt.s32.totalorder %s536_s26, %s536_s26 }
   0xe   :  { %p543_p6 = por %p542_p5, %p541_p4 }
  0x10   :  { %p544_p7 = pnand %p543_p6, %p537_p3 }
  0x12   :  { %547 = shalt.err (!%p544_p7)
}
  0x13   :  { %s713_s27 = smov 64   ;;  %s714_s28 = smov 4  }
  0x14   :  { %42 = dma.hbm_to_vmem [thread:$0]  %s920_s1, 128, %s37_s18, [#allocation6], %s713_s27, %s713_s27, %s714_s28  }
  0x15   :  { %s715_s12 = smov [#allocation8]   ;;  %s716_s14 = smov [#allocation11]  }
  0x16   :  { %s62_s13 = sshll.u32 %s715_s12, 4  ;;  %s85_s15 = sshll.u32 %s716_s14, 4  ;;  %s63_s13 = int_to_ptr.vmem [resolvable:$true] %s62_s13  ;;  %s86_s15 = int_to_ptr.vmem [resolvable:$true] %s85_s15 }
  0x17   :  { %s548_s19 = scalar_lea.hbm %s924_s5, 512 }
  0x18   :  { %p549_p8 = scmp.ne.s32.totalorder %s924_s5, %s548_s19  ;;  %p552_p9 = scmp.lt.u32.totalorder %s548_s19, %s924_s5 }
  0x1a   :  { %p554_p10 = pnand %p552_p9, %p549_p8 }
  0x1c   :  { %557 = shalt.err (!%p554_p10)
}
  0x1d   :  { %s558_s1 = scalar_lea.vmem %s63_s13, 512  ;;  %p563_p12 = scmp.lt.s32.totalorder %s63_s13, %s63_s13 }
  0x1e   :  { %p559_p11 = scmp.ne.s32.totalorder %s63_s13, %s558_s1  ;;  %p564_p13 = scmp.lt.s32.totalorder %s558_s1, %s558_s1 }
  0x20   :  { %p565_p0 = por %p564_p13, %p563_p12 }
  0x22   :  { %p566_p1 = pnand %p565_p0, %p559_p11 }
  0x24   :  { %569 = shalt.err (!%p566_p1)
}
  0x25   :  { %68 = dma.hbm_to_vmem [thread:$0]  %s924_s5, 512, %s63_s13, [#allocation9], %s713_s27, %s713_s27, %s714_s28  }
  0x26   :  { %s570_s29 = scalar_lea.hbm %s926_s7, 16 }
  0x27   :  { %p571_p2 = scmp.ne.s32.totalorder %s926_s7, %s570_s29  ;;  %p574_p3 = scmp.lt.u32.totalorder %s570_s29, %s926_s7 }
  0x29   :  { %p576_p4 = pnand %p574_p3, %p571_p2 }
  0x2b   :  { %579 = shalt.err (!%p576_p4)
}
  0x2c   :  { %s580_s17 = scalar_lea.vmem %s86_s15, 16  ;;  %s584_s19 = scalar_lea.vmem %s86_s15, 32 }
  0x2d   :  { %p581_p5 = scmp.ne.s32.totalorder %s86_s15, %s580_s17  ;;  %p585_p6 = scmp.lt.s32.totalorder %s86_s15, %s86_s15 }
  0x2e   :  { %p586_p7 = scmp.lt.s32.totalorder %s584_s19, %s580_s17 }
  0x30   :  { %p587_p8 = por %p586_p7, %p585_p6 }
  0x32   :  { %p588_p9 = pnand %p587_p8, %p581_p5 }
  0x34   :  { %591 = shalt.err (!%p588_p9)
}
  0x35   :  { %88 = dma.hbm_to_vmem [thread:$0]  %s926_s7, 16, %s86_s15, [#allocation12]  }
  0x36   :  { %s717_s28 = smov [#allocation2]   ;;  %s718_s20 = smov [#allocation7]  }
  0x37   :  { %s27_s13 = sshll.u32 %s717_s28, 4  ;;  %s53_s21 = sshll.u32 %s718_s20, 4  ;;  %s28_s13 = int_to_ptr.vmem [resolvable:$true] %s27_s13  ;;  %s54_s21 = int_to_ptr.vmem [resolvable:$true] %s53_s21 }
  0x38   :  { %s592_s1 = scalar_lea.hbm %s919_s0, 128 }
  0x39   :  { %p593_p10 = scmp.ne.s32.totalorder %s919_s0, %s592_s1  ;;  %p596_p11 = scmp.lt.u32.totalorder %s592_s1, %s919_s0 }
  0x3b   :  { %p598_p12 = pnand %p596_p11, %p593_p10 }
  0x3d   :  { %601 = shalt.err (!%p598_p12)
}
  0x3e   :  { %s602_s7 = scalar_lea.vmem %s28_s13, 128  ;;  %p607_p0 = scmp.lt.s32.totalorder %s28_s13, %s28_s13 }
  0x3f   :  { %p603_p13 = scmp.ne.s32.totalorder %s28_s13, %s602_s7  ;;  %p608_p1 = scmp.lt.s32.totalorder %s602_s7, %s602_s7 }
  0x41   :  { %p609_p2 = por %p608_p1, %p607_p0 }
  0x43   :  { %p610_p3 = pnand %p609_p2, %p603_p13 }
  0x45   :  { %613 = shalt.err (!%p610_p3)
}
  0x46   :  { %30 = dma.hbm_to_vmem [thread:$0]  %s919_s0, 128, %s28_s13, [#allocation3]  }
  0x47   :  { %s614_s14 = scalar_lea.hbm %s923_s4, 16 }
  0x48   :  { %p615_p4 = scmp.ne.s32.totalorder %s923_s4, %s614_s14  ;;  %p618_p5 = scmp.lt.u32.totalorder %s614_s14, %s923_s4 }
  0x4a   :  { %p620_p6 = pnand %p618_p5, %p615_p4 }
  0x4c   :  { %623 = shalt.err (!%p620_p6)
}
  0x4d   :  { %s624_s27 = scalar_lea.vmem %s54_s21, 16  ;;  %s628_s28 = scalar_lea.vmem %s54_s21, 32 }
  0x4e   :  { %p625_p7 = scmp.ne.s32.totalorder %s54_s21, %s624_s27  ;;  %p629_p8 = scmp.lt.s32.totalorder %s54_s21, %s54_s21 }
  0x4f   :  { %p630_p9 = scmp.lt.s32.totalorder %s628_s28, %s624_s27 }
  0x51   :  { %p631_p10 = por %p630_p9, %p629_p8 }
  0x53   :  { %p632_p11 = pnand %p631_p10, %p625_p7 }
  0x55   :  { %635 = shalt.err (!%p632_p11)
}
  0x56   :  { %56 = dma.hbm_to_vmem [thread:$0]  %s923_s4, 16, %s54_s21, [#allocation6]  }
  0x57   :  { %s719_s20 = smov [#allocation10]   ;;  %s720_s23 = smov [#allocation13]  }
  0x58   :  { %s75_s22 = sshll.u32 %s719_s20, 4  ;;  %s95_s1 = sshll.u32 %s720_s23, 4  ;;  %s76_s22 = int_to_ptr.vmem [resolvable:$true] %s75_s22  ;;  %s96_s1 = int_to_ptr.vmem [resolvable:$true] %s95_s1 }
  0x59   :  { %s636_s25 = scalar_lea.hbm %s925_s6, 16 }
  0x5a   :  { %p637_p12 = scmp.ne.s32.totalorder %s925_s6, %s636_s25  ;;  %p640_p13 = scmp.lt.u32.totalorder %s636_s25, %s925_s6 }
  0x5c   :  { %p642_p0 = pnand %p640_p13, %p637_p12 }
  0x5e   :  { %645 = shalt.err (!%p642_p0)
}
  0x5f   :  { %s646_s4 = scalar_lea.vmem %s76_s22, 16  ;;  %s650_s21 = scalar_lea.vmem %s76_s22, 32 }
  0x60   :  { %p647_p1 = scmp.ne.s32.totalorder %s76_s22, %s646_s4  ;;  %p651_p2 = scmp.lt.s32.totalorder %s76_s22, %s76_s22 }
  0x61   :  { %p652_p3 = scmp.lt.s32.totalorder %s650_s21, %s646_s4 }
  0x63   :  { %p653_p4 = por %p652_p3, %p651_p2 }
  0x65   :  { %p654_p5 = pnand %p653_p4, %p647_p1 }
  0x67   :  { %657 = shalt.err (!%p654_p5)
}
  0x68   :  { %78 = dma.hbm_to_vmem [thread:$0]  %s925_s6, 16, %s76_s22, [#allocation9]  }
  0x69   :  { %s658_s17 = scalar_lea.hbm %s927_s8, 16 }
  0x6a   :  { %p659_p6 = scmp.ne.s32.totalorder %s927_s8, %s658_s17  ;;  %p662_p7 = scmp.lt.u32.totalorder %s658_s17, %s927_s8 }
  0x6c   :  { %p664_p8 = pnand %p662_p7, %p659_p6 }
  0x6e   :  { %667 = shalt.err (!%p664_p8)
}
  0x6f   :  { %s668_s0 = scalar_lea.vmem %s96_s1, 16  ;;  %s672_s13 = scalar_lea.vmem %s96_s1, 32 }
  0x70   :  { %p669_p9 = scmp.ne.s32.totalorder %s96_s1, %s668_s0  ;;  %p673_p10 = scmp.lt.s32.totalorder %s96_s1, %s96_s1 }
  0x71   :  { %p674_p11 = scmp.lt.s32.totalorder %s672_s13, %s668_s0 }
  0x73   :  { %p675_p12 = por %p674_p11, %p673_p10 }
  0x75   :  { %p676_p13 = pnand %p675_p12, %p669_p9 }
  0x77   :  { %679 = shalt.err (!%p676_p13)
}
  0x78   :  { %98 = dma.hbm_to_vmem [thread:$0]  %s927_s8, 16, %s96_s1, [#allocation12]  }
  0x79   :  { %702 = dma.done.wait [#allocation3], 128  }
  0x7a   :  { %703 = vsyncadd [#allocation3], 4294967168 }
  0x7b   :  { %704 = dma.done.wait [#allocation6], 144  }
  0x7c   :  { %705 = vsyncadd [#allocation6], 4294967152 }
  0x7d   :  { %706 = dma.done.wait [#allocation9], 528  }
  0x7e   :  { %707 = vsyncadd [#allocation9], 4294966768 }
  0x7f   :  { %708 = dma.done.wait [#allocation12], 32  }
  0x80   :  { %709 = vsyncadd [#allocation12], 4294967264  ;;  %v721_v0 = vmov 0.0   ;;  %vm722_vm0 = vmmov 0   ;;  %v507_v1 = vld [vmem:[#allocation5] sm:$0xff]   ;;  %v125_v2 = vld [vmem:[#allocation2] sm:$0xff] }
  0x81   :  { %465 = vmatprep.subr.bf16.mxu0 %v721_v0  ;;  %467 = vmatprep.mubr.msk.bf16.mxu0 %vm722_vm0, %v721_v0  ;;  %vm144_vm1 = vcmask 130048   ;;  %v131_v3 = vpack.c.bf16 %v125_v2, %v125_v2  ;;  %v434_v4 = vld [vmem:[%s921_s2] ss:$0 sm:$0xff]  ;;  %vm188_vm2 = vcmask 523264   ;;  %v508_v16 = vld [vmem:[#allocation8] sm:$0xff]   ;;  %v510_v18 = vld [vmem:[#allocation8 + $0x10] sm:$0xff]  }
  0x82   :  { %471 = vmatprep.subr.bf16.mxu1 %v721_v0  ;;  %479 = vmatprep.mubr.msk.bf16.mxu1 %vm722_vm0, %v721_v0  ;;  %v509_v17 = vld [vmem:[#allocation8 + $0x8] sm:$0xff]   ;;  %v511_v19 = vld [vmem:[#allocation8 + $0x18] sm:$0xff]   ;;  %v439_v31 = vld [vmem:[#allocation10] ss:$0 sm:$0xff]  ;;  %s723_s4 = smov [#allocation14]  }
  0x83   :  { %466 = vmatpush3.bf16.msra.mxu0 %v507_v1  ;;  %472 = vmatpush3.bf16.msra.mxu1 %v508_v16  ;;  %v437_v24 = vld [vmem:[%s922_s3] ss:$0 sm:$0xff]  ;;  %v438_v26 = vld [vmem:[#allocation7] ss:$0 sm:$0xff]  ;;  %v513_v44 = vld [vmem:[%s928_s9 + $0x8] sm:$0xff]   ;;  %s422_s21 = sshll.u32 %s723_s4, 4  ;;  %s423_s21 = int_to_ptr.vmem [resolvable:$true] %s422_s21 }
  0x84   :  { %483 = vmatprep.subr.bf16.mxu0 %v721_v0  ;;  %473 = vmatprep.subr.bf16.mxu1 %v721_v0  ;;  %v512_v43 = vld [vmem:[%s928_s9] sm:$0xff]   ;;  %v514_v45 = vld [vmem:[%s928_s9 + $0x10] sm:$0xff]   ;;  %v515_v46 = vld [vmem:[%s928_s9 + $0x18] sm:$0xff]   ;;  %s680_s30 = scalar_lea.vmem %s423_s21, 128  ;;  %p685_p1 = scmp.lt.s32.totalorder %s423_s21, %s423_s21 }
  0x85   :  { %v445_v51 = vld [vmem:[#allocation11] ss:$0 sm:$0xff]  ;;  %v446_v53 = vld [vmem:[#allocation13] ss:$0 sm:$0xff]  ;;  %v447_v58 = vld [vmem:[%s929_s10] ss:$0 sm:$0xff]  ;;  %p681_p0 = scmp.ne.s32.totalorder %s423_s21, %s680_s30  ;;  %p686_p2 = scmp.lt.s32.totalorder %s680_s30, %s680_s30 }
  0x86   :  { %468 = vmatmul.mubr.msk.bf16.vlgmr.msra.gmra.mrb[0].mxu0 %vm144_vm1, %v131_v3 }
  0x87   :  { %491 = vmatprep.mubr.msk.bf16.mxu0 %vm722_vm0, %v721_v0  ;;  %474 = vmatpush3.bf16.msra.mxu1 %v509_v17  ;;  %p687_p3 = por %p686_p2, %p685_p1 }
  0x88   :  { %475 = vmatprep.subr.bf16.mxu1 %v721_v0  ;;  %484 = vmatpush3.bf16.msra.mxu0 %v512_v43 }
  0x89   :  { %485 = vmatprep.subr.bf16.mxu0 %v721_v0  ;;  %p688_p4 = pnand %p687_p3, %p681_p0 }
  0x8b   :  { %476 = vmatpush3.bf16.msra.mxu1 %v510_v18 }
  0x8c   :  { %477 = vmatprep.subr.bf16.mxu1 %v721_v0  ;;  %486 = vmatpush3.bf16.msra.mxu0 %v513_v44 }
  0x8d   :  { %487 = vmatprep.subr.bf16.mxu0 %v721_v0 }
  0x8f   :  { %478 = vmatpush3.bf16.msra.mxu1 %v511_v19 }
  0x90   :  { %488 = vmatpush3.bf16.msra.mxu0 %v514_v45 }
  0x91   :  { %489 = vmatprep.subr.bf16.mxu0 %v721_v0 }
  0x94   :  { %490 = vmatpush3.bf16.msra.mxu0 %v515_v46 }
 0x159   :  { %v182_v5 = vpop.f32.mrb[0].mxu0 }
 0x15a   :  { %v183_v6 = vadd.f32 %v434_v4, %v182_v5  ;;  %v469_v7 = vpop.f32.mrb[1].mxu0 }
 0x15b   :  { %v185_v8 = vpop.f32.mrb[2].mxu0 }
 0x15c   :  { %v470_v9 = vpop.f32.mrb[3].mxu0  ;;  %v189_v10 = vsel %vm188_vm2, %v183_v6, 0.0 }
 0x15d   :  { %190 = vadd.xlane.f32.xlu0 %v189_v10 }
 0x1ea   :  { %v191_v11 = vpop.xlane.xlu0 %190 }
 0x1eb   :  { %v193_v12 = vmul.f32 0.015625, %v191_v11 }
 0x1ed   :  { %v194_v13 = vsub.f32 %v183_v6, %v193_v12 }
 0x1ef   :  { %v195_v14 = vmul.f32 %v194_v13, %v194_v13 }
 0x1f1   :  { %v196_v15 = vsel %vm188_vm2, %v195_v14, 0.0 }
 0x1f2   :  { %197 = vadd.xlane.f32.xlu0 %v196_v15 }
 0x27f   :  { %v198_v20 = vpop.xlane.xlu0 %197 }
 0x280   :  { %v199_v21 = vmul.f32 0.015625, %v198_v20 }
 0x282   :  { %v200_v22 = vadd.f32 1e-05, %v199_v21 }
 0x284   :  { %516 = vrsqrt.f32 %v200_v22 }
 0x28e   :  { %v517_v23 = vpop.eup %516 }
 0x28f   :  { %v202_v25 = vmul.f32 %v517_v23, %v194_v13 }
 0x291   :  { %v209_v27 = vmul.f32 %v437_v24, %v202_v25 }
 0x293   :  { %v216_v28 = vadd.f32 %v438_v26, %v209_v27 }
 0x295   :  { %518 = vtanh.f32 %v216_v28 }
 0x29f   :  { %v519_v29 = vpop.eup %518 }
 0x2a0   :  { %v229_v30 = vpack.c.bf16 %v519_v29, %v519_v29 }
 0x2a2   :  { %480 = vmatmul.mubr.msk.bf16.vlgmr.msra.gmra.mrb[0].mxu1 %vm188_vm2, %v229_v30 }
 0x375   :  { %v297_v32 = vpop.f32.mrb[0].mxu1 }
 0x376   :  { %v298_v33 = vadd.f32 %v439_v31, %v297_v32  ;;  %v481_v34 = vpop.f32.mrb[1].mxu1 }
 0x377   :  { %v300_v35 = vpop.f32.mrb[2].mxu1 }
 0x378   :  { %v482_v36 = vpop.f32.mrb[3].mxu1  ;;  %v303_v37 = vsel %vm188_vm2, %v298_v33, 0.0 }
 0x379   :  { %304 = vadd.xlane.f32.xlu1 %v303_v37 }
 0x406   :  { %v305_v38 = vpop.xlane.xlu1 %304 }
 0x407   :  { %v306_v39 = vmul.f32 0.015625, %v305_v38 }
 0x409   :  { %v307_v40 = vsub.f32 %v298_v33, %v306_v39 }
 0x40b   :  { %v308_v41 = vmul.f32 %v307_v40, %v307_v40 }
 0x40d   :  { %v309_v42 = vsel %vm188_vm2, %v308_v41, 0.0 }
 0x40e   :  { %310 = vadd.xlane.f32.xlu1 %v309_v42 }
 0x49b   :  { %v311_v47 = vpop.xlane.xlu1 %310 }
 0x49c   :  { %v312_v48 = vmul.f32 0.015625, %v311_v47 }
 0x49e   :  { %v313_v49 = vadd.f32 1e-05, %v312_v48 }
 0x4a0   :  { %520 = vrsqrt.f32 %v313_v49 }
 0x4aa   :  { %v521_v50 = vpop.eup %520 }
 0x4ab   :  { %v315_v52 = vmul.f32 %v521_v50, %v307_v40 }
 0x4ad   :  { %v322_v54 = vmul.f32 %v445_v51, %v315_v52 }
 0x4af   :  { %v329_v55 = vadd.f32 %v446_v53, %v322_v54 }
 0x4b1   :  { %522 = vtanh.f32 %v329_v55 }
 0x4bb   :  { %v523_v56 = vpop.eup %522 }
 0x4bc   :  { %v331_v57 = vpack.c.bf16 %v523_v56, %v523_v56 }
 0x4be   :  { %492 = vmatmul.mubr.msk.bf16.vlgmr.msra.gmra.mrb[4].mxu0 %vm188_vm2, %v331_v57 }
 0x591   :  { %v408_v59 = vpop.f32.mrb[4].mxu0 }
 0x592   :  { %v409_v60 = vadd.f32 %v447_v58, %v408_v59  ;;  %v493_v61 = vpop.f32.mrb[5].mxu0 }
 0x593   :  { %v411_v62 = vpop.f32.mrb[6].mxu0 }
 0x594   :  { %524 = vtanh.f32 %v409_v60  ;;  %v494_v63 = vpop.f32.mrb[7].mxu0 }
 0x59e   :  { %v525_v0 = vpop.eup %524 }
 0x59f   :  { %415 = vst [vmem:[#allocation14] sm:$0xff] %v525_v0 }
 0x5a0   :  { %691 = shalt.err (!%p688_p4)
}
 0x5a1   :  { %s692_s14 = scalar_lea.hbm %s930_s11, 128 }
 0x5a2   :  { %p693_p5 = scmp.ne.s32.totalorder %s930_s11, %s692_s14  ;;  %p696_p6 = scmp.lt.u32.totalorder %s692_s14, %s930_s11 }
 0x5a4   :  { %p698_p7 = pnand %p696_p6, %p693_p5 }
 0x5a6   :  { %701 = shalt.err (!%p698_p7)
}
 0x5a7   :  { %425 = dma.vmem_to_hbm [thread:$0]  %s423_s21, 128, %s930_s11, [#allocation4]  }
 0x5a8   :  { %710 = dma.done.wait [#allocation4], 128  }
 0x5a9   :  { %711 = vsyncadd [#allocation4], 4294967168 }
 0x5aa   :  { %429 = vsyncpa [#allocation3], 1 }
 0x5ab   :  { %430 = vsyncpa [#allocation6], 1 }
 0x5ac   :  { %431 = vsyncpa [#allocation9], 1 }
 0x5ad   :  { %432 = vsyncpa [#allocation12], 1 }
 0x5ae   :  { %433 = vsyncpa [#allocation4], 1 }

</bundles_post_ra>
